<compile_context>
chip_gen: v7x
topology: tpu7x:2x2x1
jax: 0.10.0
libtpu: 0.0.40
codegen_flags: <defaults>
</compile_context>

<pallas_src>
from functools import partial

import jax
import jax.numpy as jnp
import numpy as np
from jax import lax
from jax.experimental import pallas as pl
from jax.experimental.pallas import tpu as pltpu


def _round_up(x: int, m: int) -> int:
    return ((x + m - 1) // m) * m


def dense_encoder_kernel(x_ref, w1t_ref, w2_ref, b_ref, o_ref, *, inner_dim, out_dim):
    # fc1 + ReLU: cast activations to bf16 in-kernel; w1 arrives lane-dense as
    # [I, D] bf16; contract on the last dim of both operands, f32 accumulation.
    xb = x_ref[...].astype(jnp.bfloat16)
    h = lax.dot_general(xb, w1t_ref[...], (((1,), (1,)), ((), ())),
                        preferred_element_type=jnp.float32)
    h = jnp.maximum(h + b_ref[0:1, 0:inner_dim], 0.0)      # row 0 of packed bias = b1
    # fc2 + ReLU: tiny matmul, kept entirely in f32 (no bf16 rounding of h).
    o = jnp.dot(h, w2_ref[...], preferred_element_type=jnp.float32)
    o = jnp.maximum(o + b_ref[1:2, 0:out_dim], 0.0)         # row 1 of packed bias = b2
    o_ref[...] = o.astype(o_ref.dtype)


def dense_encoder_forward(x_flat, w1t_bf16, w2_f32, bias_packed):
    """x_flat: [B, D] f32; w1t_bf16: [I, D] bf16; w2_f32: [I, K] f32;
    bias_packed: [2, Wb] f32 (row 0 = b1, row 1 = b2, zero-padded) -> [B, K] f32."""
    B, D = x_flat.shape
    I = w1t_bf16.shape[0]
    K = w2_f32.shape[1]
    vmem = pltpu.MemorySpace.VMEM

    flops = 2 * B * (D * I + I * K)

    # bytes_accessed reflects the *padded* tile layouts actually moved:
    # f32 tiles are (8, 128); bf16 tiles are (16, 128).
    def _padded_bytes(shape, itemsize, sublane):
        return _round_up(shape[0], sublane) * _round_up(shape[1], 128) * itemsize

    bytes_accessed = int(
        _padded_bytes(x_flat.shape, 4, 8)          # x (f32)
        + _padded_bytes(w1t_bf16.shape, 2, 16)     # w1^T (bf16, lane-dense)
        + _padded_bytes(w2_f32.shape, 4, 8)        # w2 (f32)
        + _padded_bytes(bias_packed.shape, 4, 8)   # packed biases
        + _padded_bytes((B, K), 4, 8)              # output (f32)
    )

    kernel = partial(dense_encoder_kernel, inner_dim=I, out_dim=K)

    return pl.pallas_call(
        kernel,
        out_shape=jax.ShapeDtypeStruct((B, K), jnp.float32),
        in_specs=[
            pl.BlockSpec((B, D), lambda: (0, 0), memory_space=vmem),
            pl.BlockSpec(w1t_bf16.shape, lambda: (0, 0), memory_space=vmem),
            pl.BlockSpec(w2_f32.shape, lambda: (0, 0), memory_space=vmem),
            pl.BlockSpec(bias_packed.shape, lambda: (0, 0), memory_space=vmem),
        ],
        out_specs=pl.BlockSpec((B, K), lambda: (0, 0), memory_space=vmem),
        cost_estimate=pl.CostEstimate(
            flops=flops, transcendentals=0, bytes_accessed=bytes_accessed),
    )(x_flat, w1t_bf16, w2_f32, bias_packed)


class DenseEncoderPallas:
    """Mirror of the PyTorch DenseEncoder; parameters initialized deterministically.

    Master parameters are f32, stored [in, out] (transposed vs torch's [out, in]).
    Kernel operands prepared once: w1 transposed to [I, D] bf16 (lane-dense),
    w2 kept f32, biases packed into a single (2, Wb) operand.
    """

    def __init__(self, input_shape, bottleneck_size=64, key=None):
        self.input_shape = tuple(input_shape)
        in_features = int(np.prod(input_shape))
        intermediate_size = max(64, bottleneck_size)
        self.in_features = in_features
        self.intermediate_size = intermediate_size
        self.bottleneck_size = bottleneck_size

        if key is None:
            key = jax.random.PRNGKey(0)
        k1, k2, k3, k4 = jax.random.split(key, 4)
        # PyTorch nn.Linear default init: U(-1/sqrt(fan_in), 1/sqrt(fan_in))
        bound1 = 1.0 / np.sqrt(in_features)
        bound2 = 1.0 / np.sqrt(intermediate_size)
        self.w1 = jax.random.uniform(k1, (in_features, intermediate_size),
                                     jnp.float32, -bound1, bound1)
        self.b1 = jax.random.uniform(k2, (1, intermediate_size),
                                     jnp.float32, -bound1, bound1)
        self.w2 = jax.random.uniform(k3, (intermediate_size, bottleneck_size),
                                     jnp.float32, -bound2, bound2)
        self.b2 = jax.random.uniform(k4, (1, bottleneck_size),
                                     jnp.float32, -bound2, bound2)

        # --- kernel-side operands ---
        # w1 transposed -> [I, D] bf16: exactly lane-dense in HBM (no 64->128
        # lane tile padding on the single largest DMA).
        self.w1t_bf16 = jnp.asarray(self.w1.T, dtype=jnp.bfloat16)
        # w2 stays f32: fc2 is tiny, so no precision loss for zero perf cost.
        self.w2_f32 = self.w2
        # Both biases packed into one operand (cuts input DMAs 5 -> 4).
        wb = max(_round_up(intermediate_size, 128), _round_up(bottleneck_size, 128))
        bias = jnp.zeros((2, wb), jnp.float32)
        bias = bias.at[0, :intermediate_size].set(self.b1[0])
        bias = bias.at[1, :bottleneck_size].set(self.b2[0])
        self.bias_packed = bias

    def __call__(self, x):
        # x: [B, C, H, W] -> flatten to [B, prod(input_shape)] (row-major, like
        # torch .view).  No wrapper-side cast/pad/slice — the kernel handles the
        # bf16 cast and emits the exact [B, bottleneck_size] f32 output.
        B = x.shape[0]
        x_flat = x.reshape(B, -1)
        return dense_encoder_forward(x_flat, self.w1t_bf16, self.w2_f32,
                                     self.bias_packed)


if __name__ == "__main__":
    key = jax.random.PRNGKey(0)
    k_x, k_params = jax.random.split(key)

    # small shapes consistent with the module: batch=2, input_shape=(4, 16, 16)
    input_shape = (4, 16, 16)
    bottleneck_size = 64
    x = jax.random.normal(k_x, (2,) + input_shape, dtype=jnp.float32)

    model = DenseEncoderPallas(input_shape, bottleneck_size, key=k_params)
    out = model(x)
    out = jax.block_until_ready(out)

    # Reference mirroring the kernel's rounding points: x and w1 rounded to
    # bf16; all accumulation and fc2 in f32.
    x_flat = x.reshape(x.shape[0], -1)
    xb = np.asarray(x_flat.astype(jnp.bfloat16).astype(jnp.float32))
    w1b = np.asarray(model.w1t_bf16.astype(jnp.float32)).T   # [D, I] f32
    w2 = np.asarray(model.w2)
    b1 = np.asarray(model.b1)
    b2 = np.asarray(model.b2)
    h = np.maximum(xb @ w1b + b1, 0.0)
    ref = np.maximum(h @ w2 + b2, 0.0)

    np.testing.assert_allclose(np.asarray(out), ref, rtol=2e-2, atol=2e-2)
    assert out.shape == (2, bottleneck_size)
    print("KERNEL_OK")
</pallas_src>

<mosaic_0001>
module attributes {stable_mosaic.version = 11 : i64} {
  func.func @dense_encoder_kernel(%arg0: memref<2x1024xf32, #tpu.memory_space<vmem>>, %arg1: memref<64x1024xbf16, #tpu.memory_space<vmem>>, %arg2: memref<64x64xf32, #tpu.memory_space<vmem>>, %arg3: memref<2x128xf32, #tpu.memory_space<vmem>>, %arg4: memref<2x64xf32, #tpu.memory_space<vmem>>) attributes {dimension_semantics = [], scalar_prefetch = 0 : i64, scratch_operands = 0 : i64, tpu.core_type = #tpu.core_type<tc>} {
    %c0 = arith.constant 0 : index
    %c0_0 = arith.constant 0 : index
    %0 = vector.load %arg0[%c0, %c0_0] : memref<2x1024xf32, #tpu.memory_space<vmem>>, vector<2x1024xf32>
    %1 = arith.truncf %0 : vector<2x1024xf32> to vector<2x1024xbf16>
    %c0_1 = arith.constant 0 : index
    %c0_2 = arith.constant 0 : index
    %2 = vector.load %arg1[%c0_1, %c0_2] : memref<64x1024xbf16, #tpu.memory_space<vmem>>, vector<64x1024xbf16>
    %cst = arith.constant dense<0.000000e+00> : vector<2x64xf32>
    %3 = tpu.matmul %1, %2, %cst {dimension_numbers = #tpu.dot_dimension_numbers<[1], [1], [0], [0], [0, 0, 1, 0], [], []>} : vector<2x1024xbf16>, vector<64x1024xbf16>, vector<2x64xf32> -> vector<2x64xf32>
    %c0_3 = arith.constant 0 : index
    %c0_4 = arith.constant 0 : index
    %4 = vector.load %arg3[%c0_3, %c0_4] : memref<2x128xf32, #tpu.memory_space<vmem>>, vector<1x64xf32>
    %5 = vector.broadcast %4 : vector<1x64xf32> to vector<2x64xf32>
    %6 = arith.addf %3, %5 : vector<2x64xf32>
    %cst_5 = arith.constant 0.000000e+00 : f32
    %7 = vector.broadcast %cst_5 : f32 to vector<2x64xf32>
    %8 = arith.maximumf %6, %7 : vector<2x64xf32>
    %c0_6 = arith.constant 0 : index
    %c0_7 = arith.constant 0 : index
    %9 = vector.load %arg2[%c0_6, %c0_7] : memref<64x64xf32, #tpu.memory_space<vmem>>, vector<64x64xf32>
    %cst_8 = arith.constant dense<0.000000e+00> : vector<2x64xf32>
    %10 = tpu.matmul %8, %9, %cst_8 {dimension_numbers = #tpu.dot_dimension_numbers<[1], [0], [0], [1], [0, 0, 1, 1], [], []>} : vector<2x64xf32>, vector<64x64xf32>, vector<2x64xf32> -> vector<2x64xf32>
    %c1 = arith.constant 1 : index
    %c0_9 = arith.constant 0 : index
    %11 = vector.load %arg3[%c1, %c0_9] : memref<2x128xf32, #tpu.memory_space<vmem>>, vector<1x64xf32>
    %12 = vector.broadcast %11 : vector<1x64xf32> to vector<2x64xf32>
    %13 = arith.addf %10, %12 : vector<2x64xf32>
    %cst_10 = arith.constant 0.000000e+00 : f32
    %14 = vector.broadcast %cst_10 : f32 to vector<2x64xf32>
    %15 = arith.maximumf %13, %14 : vector<2x64xf32>
    %c0_11 = arith.constant 0 : index
    %c0_12 = arith.constant 0 : index
    %16 = vector.load %arg4[%c0_11, %c0_12] : memref<2x64xf32, #tpu.memory_space<vmem>>, vector<2x64xf32>
    tpu.vector_store %arg4[%c0_11, %c0_12], %15 {strides = array<i32>} : memref<2x64xf32, #tpu.memory_space<vmem>>, vector<2x64xf32>,
    return
  }
}

</mosaic_0001>

<bundles_post_ra>
// kernel: tpu_custom_call.1
= control target key start
LH: loop header
LB: loop body
LE: loop exit
PB: predicated region body
PF: predicated region fallthrough
CT: control target
= control target key end

     0   :  { %9 = vsyncpa [#allocation3], 0  ;;  %s872_s0 = inlined_call_operand.hbm [shape: f32[2,1024], index: 0, kind: input, shape index: {}]   ;;  %s873_s1 = inlined_call_operand.hbm [shape: bf16[64,1024], index: 1, kind: input, shape index: {}]   ;;  %s874_s2 = inlined_call_operand.hbm [shape: f32[64,64], index: 2, kind: input, shape index: {}]   ;;  %s875_s3 = inlined_call_operand.vmem [shape: f32[2,128], index: 3, kind: input, shape index: {}]   ;;  %s876_s4 = inlined_call_operand.hbm [shape: f32[2,64], index: 4, kind: output, shape index: {}]  }
   0x1   :  { %10 = vsyncpa [#allocation6], 0 }
   0x2   :  { %11 = vsyncpa [#allocation4], 0  ;;  %s769_s15 = smov [#allocation5]   ;;  %s675_s19 = scalar_lea.hbm %s873_s1, 4096 }
   0x3   :  { %s27_s16 = sshll.u32 %s769_s15, 4  ;;  %p676_p0 = scmp.ne.s32.totalorder %s873_s1, %s675_s19  ;;  %s28_s16 = int_to_ptr.vmem [resolvable:$true] %s27_s16 }
   0x4   :  { %p679_p1 = scmp.lt.u32.totalorder %s675_s19, %s873_s1 }
   0x6   :  { %p681_p2 = pnand %p679_p1, %p676_p0 }
   0x8   :  { %684 = shalt.err (!%p681_p2)
}
   0x9   :  { %s685_s24 = scalar_lea.vmem %s28_s16, 4096  ;;  %p690_p4 = scmp.lt.s32.totalorder %s28_s16, %s28_s16 }
   0xa   :  { %p686_p3 = scmp.ne.s32.totalorder %s28_s16, %s685_s24  ;;  %p691_p5 = scmp.lt.s32.totalorder %s685_s24, %s685_s24 }
   0xc   :  { %p692_p6 = por %p691_p5, %p690_p4 }
   0xe   :  { %p693_p7 = pnand %p692_p6, %p686_p3 }
  0x10   :  { %696 = shalt.err (!%p693_p7)
}
  0x11   :  { %s770_s25 = smov 512   ;;  %s771_s26 = smov 32  }
  0x12   :  { %33 = dma.hbm_to_vmem [thread:$0]  %s873_s1, 4096, %s28_s16, [#allocation6], %s770_s25, %s770_s25, %s771_s26  }
  0x13   :  { %s772_s29 = smov [#allocation2]   ;;  %s773_s5 = smov [#allocation7]  }
  0x14   :  { %s18_s30 = sshll.u32 %s772_s29, 4  ;;  %s39_s6 = sshll.u32 %s773_s5, 4  ;;  %s19_s30 = int_to_ptr.vmem [resolvable:$true] %s18_s30  ;;  %s40_s6 = int_to_ptr.vmem [resolvable:$true] %s39_s6 }
  0x15   :  { %s697_s9 = scalar_lea.hbm %s872_s0, 256 }
  0x16   :  { %p698_p8 = scmp.ne.s32.totalorder %s872_s0, %s697_s9  ;;  %p701_p9 = scmp.lt.u32.totalorder %s697_s9, %s872_s0 }
  0x18   :  { %p703_p10 = pnand %p701_p9, %p698_p8 }
  0x1a   :  { %706 = shalt.err (!%p703_p10)
}
  0x1b   :  { %s707_s1 = scalar_lea.vmem %s19_s30, 256  ;;  %p712_p12 = scmp.lt.s32.totalorder %s19_s30, %s19_s30 }
  0x1c   :  { %p708_p11 = scmp.ne.s32.totalorder %s19_s30, %s707_s1  ;;  %p713_p13 = scmp.lt.s32.totalorder %s707_s1, %s707_s1 }
  0x1e   :  { %p714_p0 = por %p713_p13, %p712_p12 }
  0x20   :  { %p715_p1 = pnand %p714_p0, %p708_p11 }
  0x22   :  { %718 = shalt.err (!%p715_p1)
}
  0x23   :  { %21 = dma.hbm_to_vmem [thread:$0]  %s872_s0, 256, %s19_s30, [#allocation3]  }
  0x24   :  { %s719_s18 = scalar_lea.hbm %s874_s2, 1024 }
  0x25   :  { %p720_p2 = scmp.ne.s32.totalorder %s874_s2, %s719_s18  ;;  %p723_p3 = scmp.lt.u32.totalorder %s719_s18, %s874_s2 }
  0x27   :  { %p725_p4 = pnand %p723_p3, %p720_p2 }
  0x29   :  { %728 = shalt.err (!%p725_p4)
}
  0x2a   :  { %s729_s23 = scalar_lea.vmem %s40_s6, 1024  ;;  %p734_p6 = scmp.lt.s32.totalorder %s40_s6, %s40_s6 }
  0x2b   :  { %p730_p5 = scmp.ne.s32.totalorder %s40_s6, %s729_s23  ;;  %p735_p7 = scmp.lt.s32.totalorder %s729_s23, %s729_s23 }
  0x2d   :  { %p736_p8 = por %p735_p7, %p734_p6 }
  0x2f   :  { %p737_p9 = pnand %p736_p8, %p730_p5 }
  0x31   :  { %740 = shalt.err (!%p737_p9)
}
  0x32   :  { %s774_s0 = smov 128   ;;  %s775_s24 = smov 8  }
  0x33   :  { %45 = dma.hbm_to_vmem [thread:$0]  %s874_s2, 1024, %s40_s6, [#allocation6], %s774_s0, %s774_s0, %s775_s24  }
  0x34   :  { %763 = dma.done.wait [#allocation3], 256  }
  0x35   :  { %764 = vsyncadd [#allocation3], 4294967040 }
  0x36   :  { %765 = dma.done.wait [#allocation6], 5120  }
  0x37   :  { %766 = vsyncadd [#allocation6], 4294962176  ;;  %v776_v0 = vmov 1983009808   ;;  %v66_v2 = vlaneseq  ;;  %v112_v5 = vld [vmem:[#allocation5] sm:$0xff]  ;;  %v114_v7 = vld [vmem:[#allocation5 + $0x10] sm:$0xff] }
  0x38   :  { %v64_v1 = vunpack.c.l.s4 %v776_v0  ;;  %v116_v6 = vld [vmem:[#allocation5 + $0x20] sm:$0xff]  ;;  %v118_v9 = vld [vmem:[#allocation5 + $0x30] sm:$0xff]  ;;  %v59_v24 = vld [vmem:[#allocation2 + $0x8] sm:$0xff]  ;;  %vm778_vm0 = vmmov 0   ;;  %vm483_vm1 = vcmask 523264   ;;  %s780_s30 = smov [#allocation8]  }
  0x39   :  { %v67_v4 = vshrl.u32 %v66_v2, 7  ;;  %v578_v8 = vcombine.high %v112_v5, %v116_v6  ;;  %v577_v10 = vcombine.low %v112_v5, %v116_v6  ;;  %v120_v11 = vld [vmem:[#allocation5 + $0x40] sm:$0xff]  ;;  %v582_v13 = vcombine.high %v114_v7, %v118_v9  ;;  %v122_v16 = vld [vmem:[#allocation5 + $0x50] sm:$0xff]  ;;  %v113_v45 = vld [vmem:[#allocation5 + $0x8] sm:$0xff]  ;;  %s566_s5 = sshll.u32 %s780_s30, 4  ;;  %s567_s5 = int_to_ptr.vmem [resolvable:$true] %s566_s5 }
  0x3a   :  { %v65_v3 = vunpack.c.0.s8 %v64_v1  ;;  %v124_v12 = vld [vmem:[#allocation5 + $0x60] sm:$0xff]  ;;  %v581_v14 = vcombine.low %v114_v7, %v118_v9  ;;  %v126_v17 = vld [vmem:[#allocation5 + $0x70] sm:$0xff]  ;;  %v117_v46 = vld [vmem:[#allocation5 + $0x28] sm:$0xff]  ;;  %v79_v47 = vcombine.high %v59_v24, %v59_v24  ;;  %vm558_vm2 = vcmask 517120   ;;  %s741_s6 = scalar_lea.vmem %s567_s5, 32  ;;  %p746_p11 = scmp.lt.s32.totalorder %s567_s5, %s567_s5 }
  0x3b   :  { %v586_v15 = vcombine.high %v120_v11, %v124_v12  ;;  %309 = vmatprep.subr.bf16.mxu1 %v578_v8  ;;  %v590_v19 = vcombine.high %v122_v16, %v126_v17  ;;  %389 = vmatprep.subr.bf16.mxu0 %v582_v13  ;;  %v58_v20 = vld [vmem:[#allocation2] sm:$0xff]  ;;  %v128_v21 = vld [vmem:[#allocation5 + $0x80] sm:$0xff]  ;;  %v585_v28 = vcombine.low %v120_v11, %v124_v12  ;;  %v115_v48 = vld [vmem:[#allocation5 + $0x18] sm:$0xff]  ;;  %p742_p10 = scmp.ne.s32.totalorder %s567_s5, %s741_s6  ;;  %p747_p12 = scmp.lt.s32.totalorder %s741_s6, %s741_s6 }
  0x3c   :  { %v68_v18 = vsub.s32 %v65_v3, %v67_v4  ;;  %310 = vmatpush1.bf16.xpose.msra.mxu1 %v577_v10  ;;  %390 = vmatpush1.bf16.xpose.msra.mxu0 %v581_v14  ;;  %v132_v22 = vld [vmem:[#allocation5 + $0xa0] sm:$0xff]  ;;  %v130_v25 = vld [vmem:[#allocation5 + $0x90] sm:$0xff]  ;;  %v589_v30 = vcombine.low %v122_v16, %v126_v17  ;;  %v62_v44 = vcombine.high %v58_v20, %v58_v20  ;;  %v119_v49 = vld [vmem:[#allocation5 + $0x38] sm:$0xff] }
  0x3d   :  { %311 = vmatprep.subr.bf16.mxu1 %v586_v15  ;;  %391 = vmatprep.subr.bf16.mxu0 %v590_v19  ;;  %v134_v26 = vld [vmem:[#allocation5 + $0xb0] sm:$0xff]  ;;  %v594_v31 = vcombine.high %v128_v21, %v132_v22  ;;  %v136_v36 = vld [vmem:[#allocation5 + $0xc0] sm:$0xff]  ;;  %v593_v40 = vcombine.low %v128_v21, %v132_v22  ;;  %v580_v52 = vcombine.high %v113_v45, %v117_v46  ;;  %v121_v56 = vld [vmem:[#allocation5 + $0x48] sm:$0xff]  ;;  %p748_p13 = por %p747_p12, %p746_p11 }
  0x3e   :  { %v69_v23 = vrot.slane %v58_v20, %v68_v18  ;;  %v86_v27 = vrot.slane %v59_v24, %v68_v18  ;;  %v598_v33 = vcombine.high %v130_v25, %v134_v26  ;;  %v140_v37 = vld [vmem:[#allocation5 + $0xe0] sm:$0xff]  ;;  %v138_v38 = vld [vmem:[#allocation5 + $0xd0] sm:$0xff]  ;;  %v597_v41 = vcombine.low %v130_v25, %v134_v26  ;;  %v125_v57 = vld [vmem:[#allocation5 + $0x68] sm:$0xff] }
  0x3f   :  { %v142_v39 = vld [vmem:[#allocation5 + $0xf0] sm:$0xff]  ;;  %v602_v42 = vcombine.high %v136_v36, %v140_v37  ;;  %v601_v50 = vcombine.low %v136_v36, %v140_v37  ;;  %v584_v53 = vcombine.high %v115_v48, %v119_v49  ;;  %v842_v54 = vrot.slane %v62_v44, %v68_v18  ;;  %v123_v60 = vld [vmem:[#allocation5 + $0x58] sm:$0xff]  ;;  %v129_v6 = vld [vmem:[#allocation5 + $0x88] sm:$0xff]  ;;  %p749_p0 = pnand %p748_p13, %p742_p10 }
  0x40   :  { %v77_v29 = vcombine.high %v69_v23, %v69_v23  ;;  %v94_v32 = vcombine.high %v86_v27, %v86_v27  ;;  %v606_v43 = vcombine.high %v138_v38, %v142_v39  ;;  %v605_v51 = vcombine.low %v138_v38, %v142_v39  ;;  %v127_v61 = vld [vmem:[#allocation5 + $0x78] sm:$0xff]  ;;  %v133_v7 = vld [vmem:[#allocation5 + $0xa8] sm:$0xff]  ;;  %v470_v25 = vld [vmem:[#allocation7] sm:$0xff] }
  0x41   :  { %v844_v55 = vrot.slane %v79_v47, %v68_v18  ;;  %v78_v58 = vcombine.high %v842_v54, %v842_v54  ;;  %v104_v59 = vpack.c.bf16 %v69_v23, %v69_v23  ;;  %v579_v63 = vcombine.low %v113_v45, %v117_v46  ;;  %v131_v8 = vld [vmem:[#allocation5 + $0x98] sm:$0xff]  ;;  %v137_v14 = vld [vmem:[#allocation5 + $0xc8] sm:$0xff]  ;;  %v476_v36 = vld [vmem:[#allocation7 + $0x30] sm:$0xff] }
  0x42   :  { %v105_v34 = vpack.c.bf16 %v77_v29, %v77_v29  ;;  %v109_v35 = vpack.c.bf16 %v94_v32, %v94_v32  ;;  %v108_v0 = vpack.c.bf16 %v86_v27, %v86_v27  ;;  %v583_v1 = vcombine.low %v115_v48, %v119_v49  ;;  %v135_v9 = vld [vmem:[#allocation5 + $0xb8] sm:$0xff]  ;;  %v141_v15 = vld [vmem:[#allocation5 + $0xe8] sm:$0xff] }
  0x43   :  { %v95_v62 = vcombine.high %v844_v55, %v844_v55  ;;  %v588_v2 = vcombine.high %v121_v56, %v125_v57  ;;  %v592_v3 = vcombine.high %v123_v60, %v127_v61  ;;  %v107_v4 = vpack.c.bf16 %v78_v58, %v78_v58  ;;  %v139_v16 = vld [vmem:[#allocation5 + $0xd8] sm:$0xff]  ;;  %v471_v26 = vld [vmem:[#allocation7 + $0x8] sm:$0xff] }
  0x44   :  { %312 = vmatpush1.bf16.xpose.msra.mxu1 %v585_v28  ;;  %341 = vmatprep.mubr.bf16.mxu1 %v105_v34  ;;  %v587_v10 = vcombine.low %v121_v56, %v125_v57  ;;  %v591_v11 = vcombine.low %v123_v60, %v127_v61  ;;  %v596_v12 = vcombine.high %v129_v6, %v133_v7  ;;  %v143_v17 = vld [vmem:[#allocation5 + $0xf8] sm:$0xff]  ;;  %v777_v24 = vmov 0.0|0.0   ;;  %v475_v34 = vld [vmem:[#allocation7 + $0x28] sm:$0xff] }
  0x45   :  { %392 = vmatpush1.bf16.xpose.msra.mxu0 %v589_v30  ;;  %313 = vmatprep.subr.bf16.mxu1 %v594_v31  ;;  %v111_v5 = vpack.c.bf16 %v95_v62, %v95_v62  ;;  %v600_v13 = vcombine.high %v131_v8, %v135_v9  ;;  %v595_v18 = vcombine.low %v129_v6, %v133_v7  ;;  %v472_v30 = vld [vmem:[#allocation7 + $0x10] sm:$0xff]  ;;  %v473_v31 = vld [vmem:[#allocation7 + $0x18] sm:$0xff]  ;;  %v779_v39 = vmov 0.0  }
  0x46   :  { %393 = vmatprep.subr.bf16.mxu0 %v598_v33  ;;  %421 = vmatprep.mubr.bf16.mxu0 %v109_v35  ;;  %v599_v19 = vcombine.low %v131_v8, %v135_v9  ;;  %v604_v20 = vcombine.high %v137_v14, %v141_v15  ;;  %v608_v21 = vcombine.high %v139_v16, %v143_v17  ;;  %v474_v33 = vld [vmem:[#allocation7 + $0x20] sm:$0xff]  ;;  %v477_v37 = vld [vmem:[#allocation7 + $0x38] sm:$0xff] }
  0x47   :  { %v603_v22 = vcombine.low %v137_v14, %v141_v15  ;;  %v607_v23 = vcombine.low %v139_v16, %v143_v17  ;;  %v106_v27 = vpack.c.bf16 %v842_v54, %v842_v54  ;;  %v110_v28 = vpack.c.bf16 %v844_v55, %v844_v55 }
  0x48   :  { %v640_v29 = vpack.c.bf16 %v471_v26, %v470_v25  ;;  %v643_v32 = vpack.c.bf16 %v473_v31, %v472_v30  ;;  %v646_v35 = vpack.c.bf16 %v475_v34, %v474_v33  ;;  %v649_v38 = vpack.c.bf16 %v477_v37, %v476_v36 }
  0x4c   :  { %314 = vmatpush1.bf16.xpose.msra.mxu1 %v593_v40  ;;  %v576_v40 = vld [vmem:[%s875_s3] ss:$0 sm:$0xff] }
  0x4d   :  { %394 = vmatpush1.bf16.xpose.msra.mxu0 %v597_v41  ;;  %315 = vmatprep.subr.bf16.mxu1 %v602_v42 }
  0x4e   :  { %395 = vmatprep.subr.bf16.mxu0 %v606_v43 }
  0x54   :  { %316 = vmatpush1.bf16.xpose.msra.mxu1 %v601_v50 }
  0x55   :  { %396 = vmatpush1.bf16.xpose.msra.mxu0 %v605_v51  ;;  %349 = vmatprep.subr.bf16.mxu1 %v580_v52  ;;  %v609_v52 = vld [vmem:[%s875_s3 + $0x1] ss:$0 sm:$0xff] }
  0x56   :  { %429 = vmatprep.subr.bf16.mxu0 %v584_v53 }
  0x5b   :  { %342 = vmatmul.mubr.bf16.vlgmr.msra.gmra.mrb[0].mxu1 %v104_v59 }
  0x5c   :  { %350 = vmatpush1.bf16.xpose.msra.mxu1 %v579_v63  ;;  %422 = vmatmul.mubr.bf16.vlgmr.msra.gmra.mrb[0].mxu0 %v108_v0 }
  0x5d   :  { %430 = vmatpush1.bf16.xpose.msra.mxu0 %v583_v1  ;;  %351 = vmatprep.subr.bf16.mxu1 %v588_v2 }
  0x5e   :  { %431 = vmatprep.subr.bf16.mxu0 %v592_v3  ;;  %381 = vmatprep.mubr.bf16.mxu1 %v107_v4 }
  0x5f   :  { %461 = vmatprep.mubr.bf16.mxu0 %v111_v5 }
  0x64   :  { %352 = vmatpush1.bf16.xpose.msra.mxu1 %v587_v10 }
  0x65   :  { %432 = vmatpush1.bf16.xpose.msra.mxu0 %v591_v11  ;;  %353 = vmatprep.subr.bf16.mxu1 %v596_v12 }
  0x66   :  { %433 = vmatprep.subr.bf16.mxu0 %v600_v13 }
  0x6c   :  { %354 = vmatpush1.bf16.xpose.msra.mxu1 %v595_v18 }
  0x6d   :  { %434 = vmatpush1.bf16.xpose.msra.mxu0 %v599_v19  ;;  %355 = vmatprep.subr.bf16.mxu1 %v604_v20 }
  0x6e   :  { %435 = vmatprep.subr.bf16.mxu0 %v608_v21 }
  0x74   :  { %356 = vmatpush1.bf16.xpose.msra.mxu1 %v603_v22 }
  0x75   :  { %436 = vmatpush1.bf16.xpose.msra.mxu0 %v607_v23  ;;  %639 = vmatprep.subr.bf16.mxu1 %v777_v24 }
  0x7b   :  { %382 = vmatmul.mubr.bf16.vlgmr.msra.gmra.mrb[0].mxu1 %v106_v27 }
  0x7c   :  { %462 = vmatmul.mubr.bf16.vlgmr.msra.gmra.mrb[0].mxu0 %v110_v28  ;;  %641 = vmatpush3.bf16.msra.mxu1 %v640_v29 }
  0x7d   :  { %642 = vmatprep.subr.bf16.mxu1 %v777_v24  ;;  %636 = vmatprep.mubr.msk.f32.mxu1 %vm778_vm0, %v779_v39 }
  0x80   :  { %644 = vmatpush3.bf16.msra.mxu1 %v643_v32 }
  0x81   :  { %645 = vmatprep.subr.bf16.mxu1 %v777_v24 }
  0x84   :  { %647 = vmatpush3.bf16.msra.mxu1 %v646_v35 }
  0x85   :  { %648 = vmatprep.subr.bf16.mxu1 %v777_v24 }
  0x88   :  { %650 = vmatpush3.bf16.msra.mxu1 %v649_v38 }
 0x14e   :  { %v383_v41 = vpop.f32.mrb[0].mxu1 }
 0x14f   :  { %v651_v42 = vadd.f32 %v576_v40, %v383_v41  ;;  %v463_v43 = vpop.f32.mrb[0].mxu0  ;;  %v385_v44 = vpop.f32.mrb[1].mxu1 }
 0x150   :  { %v465_v45 = vpop.f32.mrb[1].mxu0  ;;  %v386_v46 = vpop.f32.mrb[2].mxu1 }
 0x151   :  { %v652_v47 = vadd.f32 %v651_v42, %v463_v43  ;;  %v466_v48 = vpop.f32.mrb[2].mxu0  ;;  %v387_v49 = vpop.f32.mrb[3].mxu1 }
 0x152   :  { %v467_v50 = vpop.f32.mrb[3].mxu0 }
 0x153   :  { %v469_v51 = vmax.f32 %v652_v47, 0.0 }
 0x155   :  { %637 = vmatmul.mubr.msk.f32.vlgmr.msra.gmra.mrb[4].mxu1 %vm483_vm1, %v469_v51 }
 0x228   :  { %v553_v53 = vpop.f32.mrb[4].mxu1 }
 0x229   :  { %v554_v54 = vadd.f32 %v609_v52, %v553_v53  ;;  %v638_v55 = vpop.f32.mrb[5].mxu1 }
 0x22b   :  { %v557_v56 = vmax.f32 %v554_v54, 0.0 }
 0x22d   :  { %559 = vst.msk [vmem:[#allocation8] sm:$0x3] %vm558_vm2, %v557_v56 }
 0x22e   :  { %752 = shalt.err (!%p749_p0)
}
 0x22f   :  { %s753_s3 = scalar_lea.hbm %s876_s4, 32 }
 0x230   :  { %p754_p1 = scmp.ne.s32.totalorder %s876_s4, %s753_s3  ;;  %p757_p2 = scmp.lt.u32.totalorder %s753_s3, %s876_s4 }
 0x232   :  { %p759_p3 = pnand %p757_p2, %p754_p1 }
 0x234   :  { %762 = shalt.err (!%p759_p3)
}
 0x235   :  { %569 = dma.vmem_to_hbm [thread:$0]  %s567_s5, 32, %s876_s4, [#allocation4]  }
 0x236   :  { %767 = dma.done.wait [#allocation4], 32  }
 0x237   :  { %768 = vsyncadd [#allocation4], 4294967264 }
 0x238   :  { %573 = vsyncpa [#allocation3], 1 }
 0x239   :  { %574 = vsyncpa [#allocation6], 1 }
 0x23a   :  { %575 = vsyncpa [#allocation4], 1 }

</bundles_post_ra>
